<compile_context>
chip_gen: v7x
topology: tpu7x:2x2x1
jax: 0.10.0
libtpu: 0.0.40
codegen_flags: <defaults>
</compile_context>

<pallas_src>
import math
from functools import partial

import jax
import jax.numpy as jnp
from jax.experimental import pallas as pl
from jax.experimental.pallas import tpu as pltpu


# ----------------------------- Pallas kernels ------------------------------

def _qkv_proj_kernel(x_ref, w_ref, b_ref, q_ref, k_ref, v_ref, *, dq, dk):
    """Fused QKV projection: y = x @ W_qkv_t + b, split into q/k/v outputs.

    W_qkv_t is pre-transposed [d_model, dq+dk+dv], bf16, with the softmax
    scale already folded into its W_Q columns. Accumulation is f32.
    """
    x = x_ref[...].astype(jnp.bfloat16)
    y = jnp.dot(x, w_ref[...], preferred_element_type=jnp.float32) + b_ref[...]
    q_ref[...] = y[:, :dq].astype(q_ref.dtype)
    k_ref[...] = y[:, dq:dq + dk].astype(k_ref.dtype)
    v_ref[...] = y[:, dq + dk:].astype(v_ref.dtype)


def qkv_projection_pallas(x, w_qkv_t, b_qkv, *, dq, dk, dv, tile_m=256):
    """x: [M, d_model] -> (q [M, dq], k [M, dk], v [M, dv]) in bfloat16."""
    M, Din = x.shape
    tm = min(tile_m, M)
    # TODO(synk): tile the N (dq+dk+dv) axis / raise vmem_limit_bytes once
    # d_model is large enough that the resident bf16 weight slab + output
    # tiles press against scoped VMEM (v5e 16 MiB, v7x 64 MiB physical).
    return pl.pallas_call(
        partial(_qkv_proj_kernel, dq=dq, dk=dk),
        out_shape=(
            jax.ShapeDtypeStruct((M, dq), jnp.bfloat16),
            jax.ShapeDtypeStruct((M, dk), jnp.bfloat16),
            jax.ShapeDtypeStruct((M, dv), jnp.bfloat16),
        ),
        grid=(pl.cdiv(M, tm),),
        in_specs=[
            pl.BlockSpec((tm, Din), lambda i: (i, 0)),
            pl.BlockSpec((Din, dq + dk + dv), lambda i: (0, 0)),
            pl.BlockSpec((1, dq + dk + dv), lambda i: (0, 0)),
        ],
        out_specs=(
            pl.BlockSpec((tm, dq), lambda i: (i, 0)),
            pl.BlockSpec((tm, dk), lambda i: (i, 0)),
            pl.BlockSpec((tm, dv), lambda i: (i, 0)),
        ),
        compiler_params=pltpu.CompilerParams(dimension_semantics=("parallel",)),
    )(x, w_qkv_t, b_qkv)


def _linear_kernel(x_ref, w_ref, b_ref, o_ref):
    # y = x @ W_t + b (W_t pre-transposed, bf16; f32 accumulate).
    x = x_ref[...].astype(jnp.bfloat16)
    o_ref[...] = (
        jnp.dot(x, w_ref[...], preferred_element_type=jnp.float32) + b_ref[...]
    ).astype(o_ref.dtype)


def linear_pallas(x, w_t, b_row, *, out_dtype, tile_m=256):
    """x: [M, Din] @ w_t: [Din, Dout] (bf16) + b_row: [1, Dout] -> [M, Dout]."""
    M, Din = x.shape
    Dout = w_t.shape[1]
    tm = min(tile_m, M)
    return pl.pallas_call(
        _linear_kernel,
        out_shape=jax.ShapeDtypeStruct((M, Dout), out_dtype),
        grid=(pl.cdiv(M, tm),),
        in_specs=[
            pl.BlockSpec((tm, Din), lambda i: (i, 0)),
            pl.BlockSpec((Din, Dout), lambda i: (0, 0)),
            pl.BlockSpec((1, Dout), lambda i: (0, 0)),
        ],
        out_specs=pl.BlockSpec((tm, Dout), lambda i: (i, 0)),
        compiler_params=pltpu.CompilerParams(dimension_semantics=("parallel",)),
    )(x, w_t, b_row)


def _mha_attn_kernel(q_ref, k_ref, v_ref, o_ref, a_ref, *, n_heads, d_k, d_v):
    """One (batch, q-tile) per grid step, heads via static lane slices.

    q_ref: [1, tq, H*d_k] bf16 (softmax scale already folded into W_Q)
    k_ref: [1, S,  H*d_k] bf16
    v_ref: [1, S,  H*d_v] bf16
    o_ref: [1, tq, H*d_v]            (head-packed context, lane-dense store)
    a_ref: [1, H,  tq, S]            (exact softmax weights, full-width stores)
    """
    H = n_heads
    q = q_ref[0]
    k = k_ref[0]
    v = v_ref[0]

    ctx_heads = []
    for h in range(H):  # static unroll; H is a small compile-time constant
        qh = q[:, h * d_k:(h + 1) * d_k]           # [tq, d_k]
        kh = k[:, h * d_k:(h + 1) * d_k]           # [S,  d_k]
        # scores = qh @ kh^T : contract d_k with d_k directly, so no
        # materialized K transpose is needed (review: v6e lowering concern).
        s = jax.lax.dot_general(
            qh, kh, (((1,), (1,)), ((), ())),
            preferred_element_type=jnp.float32)    # [tq, S] f32
        m = jnp.max(s, axis=-1, keepdims=True)
        e = jnp.exp(s - m)
        # Exact softmax: the weights are returned to the caller, so no
        # approximate EUP reciprocal here (correctness review item).
        p = e * (1.0 / jnp.sum(e, axis=-1, keepdims=True))
        a_ref[0, h, :, :] = p.astype(a_ref.dtype)  # full-width [tq, S] store
        vh = v[:, h * d_v:(h + 1) * d_v]           # [S, d_v]
        ctx_heads.append(
            jnp.dot(p.astype(vh.dtype), vh, preferred_element_type=jnp.float32))

    # Single lane-dense store of the head-packed context [tq, H*d_v]
    # (== d_model wide at real sizes) -> no masked per-head partial stores,
    # and the wrapper needs no transpose before the output projection.
    o_ref[0] = jnp.concatenate(ctx_heads, axis=-1).astype(o_ref.dtype)


def mha_attention_pallas(q, k, v, *, n_heads, d_k, d_v, attn_dtype, tile_q=128):
    """q: [bs, L, H*d_k], k: [bs, S, H*d_k], v: [bs, S, H*d_v] (all bf16).

    Returns (context [bs, L, H*d_v] bf16, attn_weights [bs, H, L, S] attn_dtype).
    """
    bs, L, _ = q.shape
    S = k.shape[1]
    H = n_heads
    tq = min(tile_q, L)  # bounded per-step working set; sweep tile_q per chip
    return pl.pallas_call(
        partial(_mha_attn_kernel, n_heads=H, d_k=d_k, d_v=d_v),
        out_shape=(
            jax.ShapeDtypeStruct((bs, L, H * d_v), q.dtype),
            jax.ShapeDtypeStruct((bs, H, L, S), attn_dtype),
        ),
        grid=(bs, pl.cdiv(L, tq)),
        in_specs=[
            pl.BlockSpec((1, tq, H * d_k), lambda b, i: (b, i, 0)),
            pl.BlockSpec((1, S, H * d_k), lambda b, i: (b, 0, 0)),
            pl.BlockSpec((1, S, H * d_v), lambda b, i: (b, 0, 0)),
        ],
        out_specs=(
            pl.BlockSpec((1, tq, H * d_v), lambda b, i: (b, i, 0)),
            pl.BlockSpec((1, H, tq, S), lambda b, i: (b, 0, i, 0)),
        ),
        compiler_params=pltpu.CompilerParams(
            dimension_semantics=("parallel", "parallel")),
    )(q, k, v)


# ----------------------------- module wrapper -------------------------------

def init_linear_params(key, d_in, d_out):
    """Deterministic nn.Linear-style init: U(-1/sqrt(d_in), 1/sqrt(d_in))."""
    kw, kb = jax.random.split(key)
    bound = 1.0 / math.sqrt(d_in)
    w = jax.random.uniform(kw, (d_out, d_in), jnp.float32, -bound, bound)
    b = jax.random.uniform(kb, (d_out,), jnp.float32, -bound, bound)
    return w, b


def init_multihead_attention(key, d_model, n_heads, d_k=None, d_v=None, q_len=8):
    d_k = d_model // n_heads if d_k is None else d_k
    d_v = d_model // n_heads if d_v is None else d_v
    keys = jax.random.split(key, 7)
    params = {
        "W_Q": init_linear_params(keys[0], d_model, d_k * n_heads),
        "W_K": init_linear_params(keys[1], d_model, d_k * n_heads),
        "W_V": init_linear_params(keys[2], d_model, d_v * n_heads),
        # P_Q / P_K exist in the PyTorch module but their outputs are never
        # consumed in this forward (res_attention=False) -> kept only as params.
        "P_Q": init_linear_params(keys[3], d_model, d_k * n_heads),
        "P_K": init_linear_params(keys[4], d_model, d_k * n_heads),
        "to_out": init_linear_params(keys[5], n_heads * d_v, d_model),
        # mirrors the PyTorch module: (d_model // n_heads) ** -0.5, lsa=False.
        "scale": jnp.float32((d_model // n_heads) ** (-0.5)),
        "pos": jax.random.normal(keys[6], (q_len, d_model), jnp.float32),
    }
    # Fused / pre-transposed / bf16 forms consumed by the Pallas kernels.
    # The softmax scale is folded into W_Q / b_Q here (once, at init) so the
    # wrapper never re-touches the Q activations.
    wq, bq = params["W_Q"]
    wk, bk = params["W_K"]
    wv, bv = params["W_V"]
    wo, bo = params["to_out"]
    scale = params["scale"]
    params["W_QKV_T"] = jnp.concatenate(
        [(wq * scale).T, wk.T, wv.T], axis=1).astype(jnp.bfloat16)
    params["b_QKV"] = jnp.concatenate([bq * scale, bk, bv])[None, :]  # f32
    params["W_O_T"] = wo.T.astype(jnp.bfloat16)
    params["b_O"] = bo[None, :]
    return params, d_k, d_v


@partial(jax.jit, static_argnames=("n_heads", "d_k", "d_v"))
def multihead_attention_forward(Q, params, *, n_heads, d_k, d_v):
    """Q: [bs, q_len, d_model] -> (output [bs, q_len, d_model],
                                   attn_weights [bs, n_heads, q_len, q_len])."""
    bs, L, d_model = Q.shape
    H = n_heads
    x2d = Q.reshape(bs * L, d_model)

    # Single fused Q/K/V projection (one pallas_call, three natural-layout
    # bf16 outputs -> no wrapper transposes / slices / scale passes).
    q2d, k2d, v2d = qkv_projection_pallas(
        x2d, params["W_QKV_T"], params["b_QKV"],
        dq=H * d_k, dk=H * d_k, dv=H * d_v)
    q_nat = q2d.reshape(bs, L, H * d_k)   # leading-dim reshape: free
    k_nat = k2d.reshape(bs, L, H * d_k)
    v_nat = v2d.reshape(bs, L, H * d_v)
    # NOTE: P_Q(pos) / P_K(pos) are dead in this forward path -> not computed.

    ctx, attn_weights = mha_attention_pallas(
        q_nat, k_nat, v_nat,
        n_heads=H, d_k=d_k, d_v=d_v, attn_dtype=Q.dtype)
    # TODO(synk): prev / key_padding_mask / attn_mask paths not implemented
    # (they default to None in the reference forward).

    # ctx is already head-packed [bs, L, H*d_v] -> straight into to_out.
    out = linear_pallas(ctx.reshape(bs * L, H * d_v),
                        params["W_O_T"], params["b_O"], out_dtype=Q.dtype)
    return out.reshape(bs, L, d_model), attn_weights


# ------------------------------ reference check -----------------------------

def _reference_forward(Q, params, n_heads, d_k, d_v):
    bs, L, d_model = Q.shape
    H = n_heads

    def lin(name, x):
        w, b = params[name]
        return x @ w.T + b

    q_s = lin("W_Q", Q).reshape(bs, L, H, d_k).transpose(0, 2, 1, 3)
    k_s = lin("W_K", Q).reshape(bs, L, H, d_k).transpose(0, 2, 3, 1)
    v_s = lin("W_V", Q).reshape(bs, L, H, d_v).transpose(0, 2, 1, 3)
    scores = jnp.einsum("bhqd,bhdk->bhqk", q_s, k_s) * params["scale"]
    attn = jax.nn.softmax(scores, axis=-1)
    out = jnp.einsum("bhqk,bhkd->bhqd", attn, v_s)
    out = out.transpose(0, 2, 1, 3).reshape(bs, L, H * d_v)
    out = lin("to_out", out)
    return out, attn


# ---------------------------------- main ------------------------------------

if __name__ == "__main__":
    bs, q_len, d_model, n_heads = 2, 8, 32, 4

    key = jax.random.PRNGKey(0)
    k_param, k_input = jax.random.split(key)
    params, d_k, d_v = init_multihead_attention(
        k_param, d_model, n_heads, q_len=q_len
    )
    Q = jax.random.normal(k_input, (bs, q_len, d_model), jnp.float32)

    out, attn = multihead_attention_forward(
        Q, params, n_heads=n_heads, d_k=d_k, d_v=d_v
    )
    out, attn = jax.block_until_ready((out, attn))

    ref_out, ref_attn = _reference_forward(Q, params, n_heads, d_k, d_v)
    assert out.shape == (bs, q_len, d_model)
    assert attn.shape == (bs, n_heads, q_len, q_len)
    # Tolerances account for bf16 MXU inputs (f32 accumulation) vs the f32
    # reference; the softmax itself is computed exactly in f32.
    assert jnp.allclose(out, ref_out, atol=4e-2, rtol=4e-2)
    assert jnp.allclose(attn, ref_attn, atol=2e-2, rtol=2e-2)

    print("KERNEL_OK")
</pallas_src>

<mosaic_0001>
module attributes {stable_mosaic.version = 11 : i64} {
  func.func @_mha_attn_kernel(%arg0: i32, %arg1: i32, %arg2: memref<1x8x32xbf16, #tpu.memory_space<vmem>>, %arg3: memref<1x8x32xbf16, #tpu.memory_space<vmem>>, %arg4: memref<1x8x32xbf16, #tpu.memory_space<vmem>>, %arg5: memref<1x8x32xbf16, #tpu.memory_space<vmem>>, %arg6: memref<1x4x8x8xf32, #tpu.memory_space<vmem>>) attributes {dimension_semantics = [#tpu.dimension_semantics<parallel>, #tpu.dimension_semantics<parallel>], iteration_bounds = array<i64: 2, 1>, scalar_prefetch = 0 : i64, scratch_operands = 0 : i64, tpu.core_type = #tpu.core_type<tc>, window_params = [{transform_indices = @transform_0, window_bounds = array<i64: 1, 8, 32>}, {transform_indices = @transform_1, window_bounds = array<i64: 1, 8, 32>}, {transform_indices = @transform_2, window_bounds = array<i64: 1, 8, 32>}, {transform_indices = @transform_3, window_bounds = array<i64: 1, 8, 32>}, {transform_indices = @transform_4, window_bounds = array<i64: 1, 4, 8, 8>}]} {
    %c0 = arith.constant 0 : index
    %c0_0 = arith.constant 0 : index
    %c0_1 = arith.constant 0 : index
    %0 = vector.load %arg2[%c0, %c0_0, %c0_1] : memref<1x8x32xbf16, #tpu.memory_space<vmem>>, vector<1x8x32xbf16>
    %1 = vector.shape_cast %0 : vector<1x8x32xbf16> to vector<8x32xbf16>
    %c0_2 = arith.constant 0 : index
    %c0_3 = arith.constant 0 : index
    %c0_4 = arith.constant 0 : index
    %2 = vector.load %arg3[%c0_2, %c0_3, %c0_4] : memref<1x8x32xbf16, #tpu.memory_space<vmem>>, vector<1x8x32xbf16>
    %3 = vector.shape_cast %2 : vector<1x8x32xbf16> to vector<8x32xbf16>
    %c0_5 = arith.constant 0 : index
    %c0_6 = arith.constant 0 : index
    %c0_7 = arith.constant 0 : index
    %4 = vector.load %arg4[%c0_5, %c0_6, %c0_7] : memref<1x8x32xbf16, #tpu.memory_space<vmem>>, vector<1x8x32xbf16>
    %5 = vector.shape_cast %4 : vector<1x8x32xbf16> to vector<8x32xbf16>
    %6 = vector.extract_strided_slice %1 {offsets = [0, 0], sizes = [8, 8], strides = [1, 1]} : vector<8x32xbf16> to vector<8x8xbf16>
    %7 = vector.extract_strided_slice %3 {offsets = [0, 0], sizes = [8, 8], strides = [1, 1]} : vector<8x32xbf16> to vector<8x8xbf16>
    %cst = arith.constant dense<0.000000e+00> : vector<8x8xf32>
    %8 = tpu.matmul %6, %7, %cst {dimension_numbers = #tpu.dot_dimension_numbers<[1], [1], [0], [0], [0, 0, 1, 0], [], []>} : vector<8x8xbf16>, vector<8x8xbf16>, vector<8x8xf32> -> vector<8x8xf32>
    %cst_8 = arith.constant dense<0xFF800000> : vector<8xf32>
    %9 = vector.multi_reduction <maximumf>, %8, %cst_8 [1] : vector<8x8xf32> to vector<8xf32>
    %10 = vector.shape_cast %9 : vector<8xf32> to vector<8x1xf32>
    %11 = vector.broadcast %10 : vector<8x1xf32> to vector<8x8xf32>
    %12 = arith.subf %8, %11 : vector<8x8xf32>
    %13 = math.exp %12 : vector<8x8xf32>
    %cst_9 = arith.constant dense<0.000000e+00> : vector<8xf32>
    %14 = vector.multi_reduction <add>, %13, %cst_9 [1] : vector<8x8xf32> to vector<8xf32>
    %15 = vector.shape_cast %14 : vector<8xf32> to vector<8x1xf32>
    %cst_10 = arith.constant 1.000000e+00 : f32
    %16 = vector.broadcast %cst_10 : f32 to vector<8x1xf32>
    %17 = arith.divf %16, %15 : vector<8x1xf32>
    %18 = vector.broadcast %17 : vector<8x1xf32> to vector<8x8xf32>
    %19 = arith.mulf %13, %18 : vector<8x8xf32>
    %c0_11 = arith.constant 0 : index
    %c0_12 = arith.constant 0 : index
    %c0_13 = arith.constant 0 : index
    %c0_14 = arith.constant 0 : index
    %20 = vector.load %arg6[%c0_11, %c0_12, %c0_13, %c0_14] : memref<1x4x8x8xf32, #tpu.memory_space<vmem>>, vector<1x1x8x8xf32>
    %21 = vector.shape_cast %20 : vector<1x1x8x8xf32> to vector<8x8xf32>
    %22 = vector.shape_cast %19 : vector<8x8xf32> to vector<1x1x8x8xf32>
    tpu.vector_store %arg6[%c0_11, %c0_12, %c0_13, %c0_14], %22 {strides = array<i32>} : memref<1x4x8x8xf32, #tpu.memory_space<vmem>>, vector<1x1x8x8xf32>,
    %23 = vector.extract_strided_slice %5 {offsets = [0, 0], sizes = [8, 8], strides = [1, 1]} : vector<8x32xbf16> to vector<8x8xbf16>
    %24 = arith.truncf %19 : vector<8x8xf32> to vector<8x8xbf16>
    %cst_15 = arith.constant dense<0.000000e+00> : vector<8x8xf32>
    %25 = tpu.matmul %24, %23, %cst_15 {dimension_numbers = #tpu.dot_dimension_numbers<[1], [0], [0], [1], [0, 0, 1, 1], [], []>} : vector<8x8xbf16>, vector<8x8xbf16>, vector<8x8xf32> -> vector<8x8xf32>
    %26 = vector.extract_strided_slice %1 {offsets = [0, 8], sizes = [8, 8], strides = [1, 1]} : vector<8x32xbf16> to vector<8x8xbf16>
    %27 = vector.extract_strided_slice %3 {offsets = [0, 8], sizes = [8, 8], strides = [1, 1]} : vector<8x32xbf16> to vector<8x8xbf16>
    %cst_16 = arith.constant dense<0.000000e+00> : vector<8x8xf32>
    %28 = tpu.matmul %26, %27, %cst_16 {dimension_numbers = #tpu.dot_dimension_numbers<[1], [1], [0], [0], [0, 0, 1, 0], [], []>} : vector<8x8xbf16>, vector<8x8xbf16>, vector<8x8xf32> -> vector<8x8xf32>
    %cst_17 = arith.constant dense<0xFF800000> : vector<8xf32>
    %29 = vector.multi_reduction <maximumf>, %28, %cst_17 [1] : vector<8x8xf32> to vector<8xf32>
    %30 = vector.shape_cast %29 : vector<8xf32> to vector<8x1xf32>
    %31 = vector.broadcast %30 : vector<8x1xf32> to vector<8x8xf32>
    %32 = arith.subf %28, %31 : vector<8x8xf32>
    %33 = math.exp %32 : vector<8x8xf32>
    %cst_18 = arith.constant dense<0.000000e+00> : vector<8xf32>
    %34 = vector.multi_reduction <add>, %33, %cst_18 [1] : vector<8x8xf32> to vector<8xf32>
    %35 = vector.shape_cast %34 : vector<8xf32> to vector<8x1xf32>
    %cst_19 = arith.constant 1.000000e+00 : f32
    %36 = vector.broadcast %cst_19 : f32 to vector<8x1xf32>
    %37 = arith.divf %36, %35 : vector<8x1xf32>
    %38 = vector.broadcast %37 : vector<8x1xf32> to vector<8x8xf32>
    %39 = arith.mulf %33, %38 : vector<8x8xf32>
    %c0_20 = arith.constant 0 : index
    %c1 = arith.constant 1 : index
    %c0_21 = arith.constant 0 : index
    %c0_22 = arith.constant 0 : index
    %40 = vector.load %arg6[%c0_20, %c1, %c0_21, %c0_22] : memref<1x4x8x8xf32, #tpu.memory_space<vmem>>, vector<1x1x8x8xf32>
    %41 = vector.shape_cast %40 : vector<1x1x8x8xf32> to vector<8x8xf32>
    %42 = vector.shape_cast %39 : vector<8x8xf32> to vector<1x1x8x8xf32>
    tpu.vector_store %arg6[%c0_20, %c1, %c0_21, %c0_22], %42 {strides = array<i32>} : memref<1x4x8x8xf32, #tpu.memory_space<vmem>>, vector<1x1x8x8xf32>,
    %43 = vector.extract_strided_slice %5 {offsets = [0, 8], sizes = [8, 8], strides = [1, 1]} : vector<8x32xbf16> to vector<8x8xbf16>
    %44 = arith.truncf %39 : vector<8x8xf32> to vector<8x8xbf16>
    %cst_23 = arith.constant dense<0.000000e+00> : vector<8x8xf32>
    %45 = tpu.matmul %44, %43, %cst_23 {dimension_numbers = #tpu.dot_dimension_numbers<[1], [0], [0], [1], [0, 0, 1, 1], [], []>} : vector<8x8xbf16>, vector<8x8xbf16>, vector<8x8xf32> -> vector<8x8xf32>
    %46 = vector.extract_strided_slice %1 {offsets = [0, 16], sizes = [8, 8], strides = [1, 1]} : vector<8x32xbf16> to vector<8x8xbf16>
    %47 = vector.extract_strided_slice %3 {offsets = [0, 16], sizes = [8, 8], strides = [1, 1]} : vector<8x32xbf16> to vector<8x8xbf16>
    %cst_24 = arith.constant dense<0.000000e+00> : vector<8x8xf32>
    %48 = tpu.matmul %46, %47, %cst_24 {dimension_numbers = #tpu.dot_dimension_numbers<[1], [1], [0], [0], [0, 0, 1, 0], [], []>} : vector<8x8xbf16>, vector<8x8xbf16>, vector<8x8xf32> -> vector<8x8xf32>
    %cst_25 = arith.constant dense<0xFF800000> : vector<8xf32>
    %49 = vector.multi_reduction <maximumf>, %48, %cst_25 [1] : vector<8x8xf32> to vector<8xf32>
    %50 = vector.shape_cast %49 : vector<8xf32> to vector<8x1xf32>
    %51 = vector.broadcast %50 : vector<8x1xf32> to vector<8x8xf32>
    %52 = arith.subf %48, %51 : vector<8x8xf32>
    %53 = math.exp %52 : vector<8x8xf32>
    %cst_26 = arith.constant dense<0.000000e+00> : vector<8xf32>
    %54 = vector.multi_reduction <add>, %53, %cst_26 [1] : vector<8x8xf32> to vector<8xf32>
    %55 = vector.shape_cast %54 : vector<8xf32> to vector<8x1xf32>
    %cst_27 = arith.constant 1.000000e+00 : f32
    %56 = vector.broadcast %cst_27 : f32 to vector<8x1xf32>
    %57 = arith.divf %56, %55 : vector<8x1xf32>
    %58 = vector.broadcast %57 : vector<8x1xf32> to vector<8x8xf32>
    %59 = arith.mulf %53, %58 : vector<8x8xf32>
    %c0_28 = arith.constant 0 : index
    %c2 = arith.constant 2 : index
    %c0_29 = arith.constant 0 : index
    %c0_30 = arith.constant 0 : index
    %60 = vector.load %arg6[%c0_28, %c2, %c0_29, %c0_30] : memref<1x4x8x8xf32, #tpu.memory_space<vmem>>, vector<1x1x8x8xf32>
    %61 = vector.shape_cast %60 : vector<1x1x8x8xf32> to vector<8x8xf32>
    %62 = vector.shape_cast %59 : vector<8x8xf32> to vector<1x1x8x8xf32>
    tpu.vector_store %arg6[%c0_28, %c2, %c0_29, %c0_30], %62 {strides = array<i32>} : memref<1x4x8x8xf32, #tpu.memory_space<vmem>>, vector<1x1x8x8xf32>,
    %63 = vector.extract_strided_slice %5 {offsets = [0, 16], sizes = [8, 8], strides = [1, 1]} : vector<8x32xbf16> to vector<8x8xbf16>
    %64 = arith.truncf %59 : vector<8x8xf32> to vector<8x8xbf16>
    %cst_31 = arith.constant dense<0.000000e+00> : vector<8x8xf32>
    %65 = tpu.matmul %64, %63, %cst_31 {dimension_numbers = #tpu.dot_dimension_numbers<[1], [0], [0], [1], [0, 0, 1, 1], [], []>} : vector<8x8xbf16>, vector<8x8xbf16>, vector<8x8xf32> -> vector<8x8xf32>
    %66 = vector.extract_strided_slice %1 {offsets = [0, 24], sizes = [8, 8], strides = [1, 1]} : vector<8x32xbf16> to vector<8x8xbf16>
    %67 = vector.extract_strided_slice %3 {offsets = [0, 24], sizes = [8, 8], strides = [1, 1]} : vector<8x32xbf16> to vector<8x8xbf16>
    %cst_32 = arith.constant dense<0.000000e+00> : vector<8x8xf32>
    %68 = tpu.matmul %66, %67, %cst_32 {dimension_numbers = #tpu.dot_dimension_numbers<[1], [1], [0], [0], [0, 0, 1, 0], [], []>} : vector<8x8xbf16>, vector<8x8xbf16>, vector<8x8xf32> -> vector<8x8xf32>
    %cst_33 = arith.constant dense<0xFF800000> : vector<8xf32>
    %69 = vector.multi_reduction <maximumf>, %68, %cst_33 [1] : vector<8x8xf32> to vector<8xf32>
    %70 = vector.shape_cast %69 : vector<8xf32> to vector<8x1xf32>
    %71 = vector.broadcast %70 : vector<8x1xf32> to vector<8x8xf32>
    %72 = arith.subf %68, %71 : vector<8x8xf32>
    %73 = math.exp %72 : vector<8x8xf32>
    %cst_34 = arith.constant dense<0.000000e+00> : vector<8xf32>
    %74 = vector.multi_reduction <add>, %73, %cst_34 [1] : vector<8x8xf32> to vector<8xf32>
    %75 = vector.shape_cast %74 : vector<8xf32> to vector<8x1xf32>
    %cst_35 = arith.constant 1.000000e+00 : f32
    %76 = vector.broadcast %cst_35 : f32 to vector<8x1xf32>
    %77 = arith.divf %76, %75 : vector<8x1xf32>
    %78 = vector.broadcast %77 : vector<8x1xf32> to vector<8x8xf32>
    %79 = arith.mulf %73, %78 : vector<8x8xf32>
    %c0_36 = arith.constant 0 : index
    %c3 = arith.constant 3 : index
    %c0_37 = arith.constant 0 : index
    %c0_38 = arith.constant 0 : index
    %80 = vector.load %arg6[%c0_36, %c3, %c0_37, %c0_38] : memref<1x4x8x8xf32, #tpu.memory_space<vmem>>, vector<1x1x8x8xf32>
    %81 = vector.shape_cast %80 : vector<1x1x8x8xf32> to vector<8x8xf32>
    %82 = vector.shape_cast %79 : vector<8x8xf32> to vector<1x1x8x8xf32>
    tpu.vector_store %arg6[%c0_36, %c3, %c0_37, %c0_38], %82 {strides = array<i32>} : memref<1x4x8x8xf32, #tpu.memory_space<vmem>>, vector<1x1x8x8xf32>,
    %83 = vector.extract_strided_slice %5 {offsets = [0, 24], sizes = [8, 8], strides = [1, 1]} : vector<8x32xbf16> to vector<8x8xbf16>
    %84 = arith.truncf %79 : vector<8x8xf32> to vector<8x8xbf16>
    %cst_39 = arith.constant dense<0.000000e+00> : vector<8x8xf32>
    %85 = tpu.matmul %84, %83, %cst_39 {dimension_numbers = #tpu.dot_dimension_numbers<[1], [0], [0], [1], [0, 0, 1, 1], [], []>} : vector<8x8xbf16>, vector<8x8xbf16>, vector<8x8xf32> -> vector<8x8xf32>
    %86 = tpu.concatenate %25, %45, %65, %85 in 1 : vector<8x8xf32>, vector<8x8xf32>, vector<8x8xf32>, vector<8x8xf32> -> vector<8x32xf32>
    %87 = arith.truncf %86 : vector<8x32xf32> to vector<8x32xbf16>
    %c0_40 = arith.constant 0 : index
    %c0_41 = arith.constant 0 : index
    %c0_42 = arith.constant 0 : index
    %88 = vector.load %arg5[%c0_40, %c0_41, %c0_42] : memref<1x8x32xbf16, #tpu.memory_space<vmem>>, vector<1x8x32xbf16>
    %89 = vector.shape_cast %88 : vector<1x8x32xbf16> to vector<8x32xbf16>
    %90 = vector.shape_cast %87 : vector<8x32xbf16> to vector<1x8x32xbf16>
    tpu.vector_store %arg5[%c0_40, %c0_41, %c0_42], %90 {strides = array<i32>} : memref<1x8x32xbf16, #tpu.memory_space<vmem>>, vector<1x8x32xbf16>,
    return
  }
  func.func @transform_0(%arg0: i32, %arg1: i32) -> (i32, i32, i32) {
    %c0_i32 = arith.constant 0 : i32
    %c0_i32_0 = arith.constant 0 : i32
    return %arg0, %arg1, %c0_i32 : i32, i32, i32
  }
  func.func @transform_1(%arg0: i32, %arg1: i32) -> (i32, i32, i32) {
    %c0_i32 = arith.constant 0 : i32
    %c0_i32_0 = arith.constant 0 : i32
    %c0_i32_1 = arith.constant 0 : i32
    return %arg0, %c0_i32, %c0_i32_0 : i32, i32, i32
  }
  func.func @transform_2(%arg0: i32, %arg1: i32) -> (i32, i32, i32) {
    %c0_i32 = arith.constant 0 : i32
    %c0_i32_0 = arith.constant 0 : i32
    %c0_i32_1 = arith.constant 0 : i32
    return %arg0, %c0_i32, %c0_i32_0 : i32, i32, i32
  }
  func.func @transform_3(%arg0: i32, %arg1: i32) -> (i32, i32, i32) {
    %c0_i32 = arith.constant 0 : i32
    %c0_i32_0 = arith.constant 0 : i32
    return %arg0, %arg1, %c0_i32 : i32, i32, i32
  }
  func.func @transform_4(%arg0: i32, %arg1: i32) -> (i32, i32, i32, i32) {
    %c0_i32 = arith.constant 0 : i32
    %c0_i32_0 = arith.constant 0 : i32
    %c0_i32_1 = arith.constant 0 : i32
    return %arg0, %c0_i32, %arg1, %c0_i32_0 : i32, i32, i32, i32
  }
}

module attributes {stable_mosaic.version = 11 : i64} {
  func.func @_qkv_proj_kernel(%arg0: i32, %arg1: memref<16x32xf32, #tpu.memory_space<vmem>>, %arg2: memref<32x96xbf16, #tpu.memory_space<vmem>>, %arg3: memref<1x96xf32, #tpu.memory_space<vmem>>, %arg4: memref<16x32xbf16, #tpu.memory_space<vmem>>, %arg5: memref<16x32xbf16, #tpu.memory_space<vmem>>, %arg6: memref<16x32xbf16, #tpu.memory_space<vmem>>) attributes {dimension_semantics = [#tpu.dimension_semantics<parallel>], iteration_bounds = array<i64: 1>, scalar_prefetch = 0 : i64, scratch_operands = 0 : i64, tpu.core_type = #tpu.core_type<tc>, window_params = [{transform_indices = @transform_0, window_bounds = array<i64: 16, 32>}, {pipeline_mode = #tpu.pipeline_mode<synchronous>, transform_indices = @transform_1, window_bounds = array<i64: 32, 96>}, {pipeline_mode = #tpu.pipeline_mode<synchronous>, transform_indices = @transform_2, window_bounds = array<i64: 1, 96>}, {transform_indices = @transform_3, window_bounds = array<i64: 16, 32>}, {transform_indices = @transform_4, window_bounds = array<i64: 16, 32>}, {transform_indices = @transform_5, window_bounds = array<i64: 16, 32>}]} {
    %c0 = arith.constant 0 : index
    %c0_0 = arith.constant 0 : index
    %0 = vector.load %arg1[%c0, %c0_0] : memref<16x32xf32, #tpu.memory_space<vmem>>, vector<16x32xf32>
    %1 = arith.truncf %0 : vector<16x32xf32> to vector<16x32xbf16>
    %c0_1 = arith.constant 0 : index
    %c0_2 = arith.constant 0 : index
    %2 = vector.load %arg2[%c0_1, %c0_2] : memref<32x96xbf16, #tpu.memory_space<vmem>>, vector<32x96xbf16>
    %cst = arith.constant dense<0.000000e+00> : vector<16x96xf32>
    %3 = tpu.matmul %1, %2, %cst {dimension_numbers = #tpu.dot_dimension_numbers<[1], [0], [0], [1], [0, 0, 1, 1], [], []>} : vector<16x32xbf16>, vector<32x96xbf16>, vector<16x96xf32> -> vector<16x96xf32>
    %c0_3 = arith.constant 0 : index
    %c0_4 = arith.constant 0 : index
    %4 = vector.load %arg3[%c0_3, %c0_4] : memref<1x96xf32, #tpu.memory_space<vmem>>, vector<1x96xf32>
    %5 = vector.broadcast %4 : vector<1x96xf32> to vector<16x96xf32>
    %6 = arith.addf %3, %5 : vector<16x96xf32>
    %7 = vector.extract_strided_slice %6 {offsets = [0, 0], sizes = [16, 32], strides = [1, 1]} : vector<16x96xf32> to vector<16x32xf32>
    %8 = arith.truncf %7 : vector<16x32xf32> to vector<16x32xbf16>
    %c0_5 = arith.constant 0 : index
    %c0_6 = arith.constant 0 : index
    %9 = vector.load %arg4[%c0_5, %c0_6] : memref<16x32xbf16, #tpu.memory_space<vmem>>, vector<16x32xbf16>
    tpu.vector_store %arg4[%c0_5, %c0_6], %8 {strides = array<i32>} : memref<16x32xbf16, #tpu.memory_space<vmem>>, vector<16x32xbf16>,
    %10 = vector.extract_strided_slice %6 {offsets = [0, 32], sizes = [16, 32], strides = [1, 1]} : vector<16x96xf32> to vector<16x32xf32>
    %11 = arith.truncf %10 : vector<16x32xf32> to vector<16x32xbf16>
    %c0_7 = arith.constant 0 : index
    %c0_8 = arith.constant 0 : index
    %12 = vector.load %arg5[%c0_7, %c0_8] : memref<16x32xbf16, #tpu.memory_space<vmem>>, vector<16x32xbf16>
    tpu.vector_store %arg5[%c0_7, %c0_8], %11 {strides = array<i32>} : memref<16x32xbf16, #tpu.memory_space<vmem>>, vector<16x32xbf16>,
    %13 = vector.extract_strided_slice %6 {offsets = [0, 64], sizes = [16, 32], strides = [1, 1]} : vector<16x96xf32> to vector<16x32xf32>
    %14 = arith.truncf %13 : vector<16x32xf32> to vector<16x32xbf16>
    %c0_9 = arith.constant 0 : index
    %c0_10 = arith.constant 0 : index
    %15 = vector.load %arg6[%c0_9, %c0_10] : memref<16x32xbf16, #tpu.memory_space<vmem>>, vector<16x32xbf16>
    tpu.vector_store %arg6[%c0_9, %c0_10], %14 {strides = array<i32>} : memref<16x32xbf16, #tpu.memory_space<vmem>>, vector<16x32xbf16>,
    return
  }
  func.func @transform_0(%arg0: i32) -> (i32, i32) {
    %c0_i32 = arith.constant 0 : i32
    %c0_i32_0 = arith.constant 0 : i32
    return %arg0, %c0_i32 : i32, i32
  }
  func.func @transform_1(%arg0: i32) -> (i32, i32) {
    %c0_i32 = arith.constant 0 : i32
    %c0_i32_0 = arith.constant 0 : i32
    %c0_i32_1 = arith.constant 0 : i32
    return %c0_i32, %c0_i32_0 : i32, i32
  }
  func.func @transform_2(%arg0: i32) -> (i32, i32) {
    %c0_i32 = arith.constant 0 : i32
    %c0_i32_0 = arith.constant 0 : i32
    %c0_i32_1 = arith.constant 0 : i32
    return %c0_i32, %c0_i32_0 : i32, i32
  }
  func.func @transform_3(%arg0: i32) -> (i32, i32) {
    %c0_i32 = arith.constant 0 : i32
    %c0_i32_0 = arith.constant 0 : i32
    return %arg0, %c0_i32 : i32, i32
  }
  func.func @transform_4(%arg0: i32) -> (i32, i32) {
    %c0_i32 = arith.constant 0 : i32
    %c0_i32_0 = arith.constant 0 : i32
    return %arg0, %c0_i32 : i32, i32
  }
  func.func @transform_5(%arg0: i32) -> (i32, i32) {
    %c0_i32 = arith.constant 0 : i32
    %c0_i32_0 = arith.constant 0 : i32
    return %arg0, %c0_i32 : i32, i32
  }
}

module attributes {stable_mosaic.version = 11 : i64} {
  func.func @_linear_kernel(%arg0: i32, %arg1: memref<16x32xbf16, #tpu.memory_space<vmem>>, %arg2: memref<32x32xbf16, #tpu.memory_space<vmem>>, %arg3: memref<1x32xf32, #tpu.memory_space<vmem>>, %arg4: memref<16x32xf32, #tpu.memory_space<vmem>>) attributes {dimension_semantics = [#tpu.dimension_semantics<parallel>], iteration_bounds = array<i64: 1>, scalar_prefetch = 0 : i64, scratch_operands = 0 : i64, tpu.core_type = #tpu.core_type<tc>, window_params = [{transform_indices = @transform_0, window_bounds = array<i64: 16, 32>}, {pipeline_mode = #tpu.pipeline_mode<synchronous>, transform_indices = @transform_1, window_bounds = array<i64: 32, 32>}, {pipeline_mode = #tpu.pipeline_mode<synchronous>, transform_indices = @transform_2, window_bounds = array<i64: 1, 32>}, {transform_indices = @transform_3, window_bounds = array<i64: 16, 32>}]} {
    %c0 = arith.constant 0 : index
    %c0_0 = arith.constant 0 : index
    %0 = vector.load %arg1[%c0, %c0_0] : memref<16x32xbf16, #tpu.memory_space<vmem>>, vector<16x32xbf16>
    %c0_1 = arith.constant 0 : index
    %c0_2 = arith.constant 0 : index
    %1 = vector.load %arg2[%c0_1, %c0_2] : memref<32x32xbf16, #tpu.memory_space<vmem>>, vector<32x32xbf16>
    %cst = arith.constant dense<0.000000e+00> : vector<16x32xf32>
    %2 = tpu.matmul %0, %1, %cst {dimension_numbers = #tpu.dot_dimension_numbers<[1], [0], [0], [1], [0, 0, 1, 1], [], []>} : vector<16x32xbf16>, vector<32x32xbf16>, vector<16x32xf32> -> vector<16x32xf32>
    %c0_3 = arith.constant 0 : index
    %c0_4 = arith.constant 0 : index
    %3 = vector.load %arg3[%c0_3, %c0_4] : memref<1x32xf32, #tpu.memory_space<vmem>>, vector<1x32xf32>
    %4 = vector.broadcast %3 : vector<1x32xf32> to vector<16x32xf32>
    %5 = arith.addf %2, %4 : vector<16x32xf32>
    %c0_5 = arith.constant 0 : index
    %c0_6 = arith.constant 0 : index
    %6 = vector.load %arg4[%c0_5, %c0_6] : memref<16x32xf32, #tpu.memory_space<vmem>>, vector<16x32xf32>
    tpu.vector_store %arg4[%c0_5, %c0_6], %5 {strides = array<i32>} : memref<16x32xf32, #tpu.memory_space<vmem>>, vector<16x32xf32>,
    return
  }
  func.func @transform_0(%arg0: i32) -> (i32, i32) {
    %c0_i32 = arith.constant 0 : i32
    %c0_i32_0 = arith.constant 0 : i32
    return %arg0, %c0_i32 : i32, i32
  }
  func.func @transform_1(%arg0: i32) -> (i32, i32) {
    %c0_i32 = arith.constant 0 : i32
    %c0_i32_0 = arith.constant 0 : i32
    %c0_i32_1 = arith.constant 0 : i32
    return %c0_i32, %c0_i32_0 : i32, i32
  }
  func.func @transform_2(%arg0: i32) -> (i32, i32) {
    %c0_i32 = arith.constant 0 : i32
    %c0_i32_0 = arith.constant 0 : i32
    %c0_i32_1 = arith.constant 0 : i32
    return %c0_i32, %c0_i32_0 : i32, i32
  }
  func.func @transform_3(%arg0: i32) -> (i32, i32) {
    %c0_i32 = arith.constant 0 : i32
    %c0_i32_0 = arith.constant 0 : i32
    return %arg0, %c0_i32 : i32, i32
  }
}

</mosaic_0001>

<bundles_post_ra>
// kernel: multihead_attention_forward.3
= control target key start
LH: loop header
LB: loop body
LE: loop exit
PB: predicated region body
PF: predicated region fallthrough
CT: control target
= control target key end

     0   :  { %11 = vsyncpa [#allocation3], 0  ;;  %s330_s0 = inlined_call_operand.hbm [shape: f32[16,32], index: 0, kind: input, shape index: {}]   ;;  %s331_s1 = inlined_call_operand.hbm [shape: bf16[32,96], index: 1, kind: input, shape index: {}]   ;;  %s332_s2 = inlined_call_operand.vmem [shape: f32[1,96], index: 2, kind: input, shape index: {}]   ;;  %s333_s3 = inlined_call_operand.vmem [shape: bf16[16,32], index: 3, kind: output, shape index: {0}]   ;;  %s334_s4 = inlined_call_operand.vmem [shape: bf16[16,32], index: 4, kind: output, shape index: {1}]   ;;  %s335_s5 = inlined_call_operand.vmem [shape: bf16[16,32], index: 5, kind: output, shape index: {2}]  }
   0x1   :  { %12 = vsyncpa [#allocation5], 0  ;;  %s236_s18 = smov [#allocation2]   ;;  %s188_s22 = scalar_lea.hbm %s330_s0, 256 }
   0x2   :  { %s18_s19 = sshll.u32 %s236_s18, 4  ;;  %p189_p0 = scmp.ne.s32.totalorder %s330_s0, %s188_s22  ;;  %s19_s19 = int_to_ptr.vmem [resolvable:$true] %s18_s19 }
   0x3   :  { %p192_p1 = scmp.lt.u32.totalorder %s188_s22, %s330_s0 }
   0x5   :  { %p194_p2 = pnand %p192_p1, %p189_p0 }
   0x7   :  { %197 = shalt.err (!%p194_p2)
}
   0x8   :  { %s198_s27 = scalar_lea.vmem %s19_s19, 256  ;;  %p203_p4 = scmp.lt.s32.totalorder %s19_s19, %s19_s19 }
   0x9   :  { %p199_p3 = scmp.ne.s32.totalorder %s19_s19, %s198_s27  ;;  %p204_p5 = scmp.lt.s32.totalorder %s198_s27, %s198_s27 }
   0xb   :  { %p205_p6 = por %p204_p5, %p203_p4 }
   0xd   :  { %p206_p7 = pnand %p205_p6, %p199_p3 }
   0xf   :  { %209 = shalt.err (!%p206_p7)
}
  0x10   :  { %s237_s28 = smov 128   ;;  %s238_s29 = smov 8  }
  0x11   :  { %24 = dma.hbm_to_vmem [thread:$0]  %s330_s0, 256, %s19_s19, [#allocation3], %s237_s28, %s237_s28, %s238_s29  }
  0x12   :  { %s239_s7 = smov [#allocation4]   ;;  %s210_s11 = scalar_lea.hbm %s331_s1, 256 }
  0x13   :  { %s30_s8 = sshll.u32 %s239_s7, 4  ;;  %p211_p8 = scmp.ne.s32.totalorder %s331_s1, %s210_s11  ;;  %s31_s8 = int_to_ptr.vmem [resolvable:$true] %s30_s8 }
  0x14   :  { %p214_p9 = scmp.lt.u32.totalorder %s210_s11, %s331_s1 }
  0x16   :  { %p216_p10 = pnand %p214_p9, %p211_p8 }
  0x18   :  { %219 = shalt.err (!%p216_p10)
}
  0x19   :  { %s220_s16 = scalar_lea.vmem %s31_s8, 256  ;;  %p225_p12 = scmp.lt.s32.totalorder %s31_s8, %s31_s8 }
  0x1a   :  { %p221_p11 = scmp.ne.s32.totalorder %s31_s8, %s220_s16  ;;  %p226_p13 = scmp.lt.s32.totalorder %s220_s16, %s220_s16 }
  0x1c   :  { %p227_p0 = por %p226_p13, %p225_p12 }
  0x1e   :  { %p228_p1 = pnand %p227_p0, %p221_p11 }
  0x20   :  { %231 = shalt.err (!%p228_p1)
}
  0x21   :  { %s240_s0 = smov 64   ;;  %s241_s17 = smov 4  }
  0x22   :  { %36 = dma.hbm_to_vmem [thread:$0]  %s331_s1, 256, %s31_s8, [#allocation5], %s240_s0, %s240_s0, %s241_s17  }
  0x23   :  { %232 = dma.done.wait [#allocation3], 256  }
  0x24   :  { %233 = vsyncadd [#allocation3], 4294967040 }
  0x25   :  { %234 = dma.done.wait [#allocation5], 256  }
  0x26   :  { %235 = vsyncadd [#allocation5], 4294967040  ;;  %v242_v0 = vmov 0.0   ;;  %vm243_vm0 = vmmov 0   ;;  %v186_v1 = vld [vmem:[#allocation4] sm:$0xff]   ;;  %v187_v2 = vld [vmem:[#allocation4 + $0x8] sm:$0xff]  }
  0x27   :  { %169 = vmatprep.subr.bf16.mxu0 %v242_v0  ;;  %173 = vmatprep.mubr.msk.bf16.mxu0 %vm243_vm0, %v242_v0  ;;  %v46_v3 = vld [vmem:[#allocation2] sm:$0xff]  ;;  %v47_v4 = vld [vmem:[#allocation2 + $0x8] sm:$0xff]  ;;  %vm72_vm1 = vcmask 261120   ;;  %vm125_vm2 = vcmask 257024   ;;  %s244_s23 = smov 96  }
  0x28   :  { %170 = vmatpush3.bf16.msra.mxu0 %v186_v1  ;;  %v48_v5 = vpack.c.bf16 %v47_v4, %v46_v3  ;;  %v158_v6 = vld [vmem:[%s332_s2] ss:$0 sm:$0xff] }
  0x29   :  { %171 = vmatprep.subr.bf16.mxu0 %v242_v0 }
  0x2c   :  { %172 = vmatpush3.bf16.msra.mxu0 %v187_v2 }
  0x2f   :  { %174 = vmatmul.mubr.msk.bf16.vlgmr.msra.gmra.mrb[0].mxu0 %vm72_vm1, %v48_v5 }
 0x102   :  { %v110_v7 = vpop.f32.mrb[0].mxu0 }
 0x103   :  { %v111_v8 = vadd.f32 %v158_v6, %v110_v7  ;;  %v175_v9 = vpop.f32.mrb[1].mxu0 }
 0x104   :  { %v113_v10 = vpop.f32.mrb[2].mxu0 }
 0x105   :  { %v164_v11 = vpack.c.bf16 %v111_v8, %v111_v8  ;;  %v114_v12 = vadd.f32 %v158_v6, %v113_v10  ;;  %v176_v13 = vpop.f32.mrb[3].mxu0 }
 0x107   :  { %126 = vst.msk [vmem:[%s333_s3] sm:$0xf] %vm125_vm2, %v164_v11  ;;  %v165_v14 = vpack.c.bf16 %v114_v12, %v114_v12  ;;  %136 = vrot.lane.b32.xlu1 %v164_v11, %s240_s0  ;;  %128 = vrot.lane.b32.xlu0 %v164_v11, %s244_s23 }
 0x109   :  { %127 = vst.msk [vmem:[%s333_s3 + $0x4] sm:$0xf] %vm125_vm2, %v165_v14 }
 0x10b   :  { %138 = vrot.lane.b32.xlu1 %v165_v14, %s240_s0  ;;  %130 = vrot.lane.b32.xlu0 %v165_v14, %s244_s23 }
 0x179   :  { %v137_v15 = vpop.permute.xlu1 %136  ;;  %v129_v16 = vpop.permute.xlu0 %128 }
 0x17a   :  { %142 = vst.msk [vmem:[%s335_s5] sm:$0xf] %vm125_vm2, %v137_v15  ;;  %134 = vst.msk [vmem:[%s334_s4] sm:$0xf] %vm125_vm2, %v129_v16 }
 0x17d   :  { %v139_v17 = vpop.permute.xlu1 %138  ;;  %v131_v18 = vpop.permute.xlu0 %130 }
 0x17e   :  { %143 = vst.msk [vmem:[%s335_s5 + $0x4] sm:$0xf] %vm125_vm2, %v139_v17  ;;  %135 = vst.msk [vmem:[%s334_s4 + $0x4] sm:$0xf] %vm125_vm2, %v131_v18 }
 0x17f   :  { %156 = vsyncpa [#allocation3], 1 }
 0x180   :  { %157 = vsyncpa [#allocation5], 1 }

// kernel: multihead_attention_forward.5
= control target key start
LH: loop header
LB: loop body
LE: loop exit
PB: predicated region body
PF: predicated region fallthrough
CT: control target
= control target key end

     0   :  { %v157_v1 = vmov 0.0   ;;  %vm158_vm0 = vmmov 0   ;;  %s206_s0 = inlined_call_operand.vmem [shape: bf16[16,32], index: 0, kind: input, shape index: {}]   ;;  %s207_s1 = inlined_call_operand.vmem [shape: bf16[32,32], index: 1, kind: input, shape index: {}]   ;;  %s208_s2 = inlined_call_operand.vmem [shape: f32[1,32], index: 2, kind: input, shape index: {}]   ;;  %s209_s3 = inlined_call_operand.hbm [shape: f32[16,32], index: 3, kind: output, shape index: {}]  }
   0x1   :  { %v130_v0 = vld [vmem:[%s207_s1] sm:$0xff]   ;;  %117 = vmatprep.subr.bf16.mxu0 %v157_v1  ;;  %v131_v2 = vld [vmem:[%s207_s1 + $0x8] sm:$0xff]   ;;  %121 = vmatprep.mubr.msk.bf16.mxu0 %vm158_vm0, %v157_v1 }
   0x2   :  { %118 = vmatpush3.bf16.msra.mxu0 %v130_v0 }
   0x3   :  { %119 = vmatprep.subr.bf16.mxu0 %v157_v1 }
   0x4   :  { %8 = vsyncpa [#allocation3], 0  ;;  %v132_v3 = vld [vmem:[%s206_s0] sm:$0xff]   ;;  %vm46_vm1 = vcmask 261120   ;;  %s159_s20 = smov [#allocation2]  }
   0x5   :  { %v109_v4 = vld [vmem:[%s208_s2] ss:$0 sm:$0xff]  ;;  %s98_s21 = sshll.u32 %s159_s20, 4  ;;  %s99_s21 = int_to_ptr.vmem [resolvable:$true] %s98_s21 }
   0x6   :  { %120 = vmatpush3.bf16.msra.mxu0 %v131_v2  ;;  %s133_s1 = scalar_lea.vmem %s99_s21, 256  ;;  %p138_p1 = scmp.lt.s32.totalorder %s99_s21, %s99_s21 }
   0x7   :  { %p134_p0 = scmp.ne.s32.totalorder %s99_s21, %s133_s1  ;;  %p139_p2 = scmp.lt.s32.totalorder %s133_s1, %s133_s1 }
   0x9   :  { %122 = vmatmul.mubr.msk.bf16.vlgmr.msra.gmra.mrb[0].mxu0 %vm46_vm1, %v132_v3  ;;  %p140_p3 = por %p139_p2, %p138_p1 }
   0xb   :  { %p141_p4 = pnand %p140_p3, %p134_p0 }
  0xdc   :  { %v84_v5 = vpop.f32.mrb[0].mxu0 }
  0xdd   :  { %v85_v6 = vadd.f32 %v109_v4, %v84_v5  ;;  %v123_v7 = vpop.f32.mrb[1].mxu0 }
  0xde   :  { %v87_v8 = vpop.f32.mrb[2].mxu0 }
  0xdf   :  { %91 = vst.msk [vmem:[#allocation2] sm:$0xff] %vm46_vm1, %v85_v6  ;;  %v88_v9 = vadd.f32 %v109_v4, %v87_v8  ;;  %v124_v10 = vpop.f32.mrb[3].mxu0 }
  0xe1   :  { %92 = vst.msk [vmem:[#allocation2 + $0x8] sm:$0xff] %vm46_vm1, %v88_v9 }
  0xe2   :  { %144 = shalt.err (!%p141_p4)
}
  0xe3   :  { %s145_s22 = scalar_lea.hbm %s209_s3, 256 }
  0xe4   :  { %p146_p5 = scmp.ne.s32.totalorder %s209_s3, %s145_s22  ;;  %p149_p6 = scmp.lt.u32.totalorder %s145_s22, %s209_s3 }
  0xe6   :  { %p151_p7 = pnand %p149_p6, %p146_p5 }
  0xe8   :  { %154 = shalt.err (!%p151_p7)
}
  0xe9   :  { %s160_s27 = smov 128   ;;  %s161_s28 = smov 8  }
  0xea   :  { %104 = dma.vmem_to_hbm [thread:$0]  %s99_s21, 256, %s209_s3, [#allocation3], %s160_s27, %s160_s27, %s161_s28  }
  0xeb   :  { %155 = dma.done.wait [#allocation3], 256  }
  0xec   :  { %156 = vsyncadd [#allocation3], 4294967040 }
  0xed   :  { %108 = vsyncpa [#allocation3], 1 }

// kernel: multihead_attention_forward.4
= control target key start
LH: loop header
LB: loop body
LE: loop exit
PB: predicated region body
PF: predicated region fallthrough
CT: control target
= control target key end

     0   :  { %10 = vsyncpa [#allocation3], 0  ;;  %s1411_s0 = inlined_call_operand.vmem [shape: bf16[2,8,32], index: 0, kind: input, shape index: {}]   ;;  %s1412_s1 = inlined_call_operand.vmem [shape: bf16[2,8,32], index: 1, kind: input, shape index: {}]   ;;  %s1413_s2 = inlined_call_operand.vmem [shape: bf16[2,8,32], index: 2, kind: input, shape index: {}]   ;;  %s1414_s3 = inlined_call_operand.vmem [shape: bf16[2,8,32], index: 3, kind: output, shape index: {0}]   ;;  %s1415_s4 = inlined_call_operand.hbm [shape: f32[2,4,8,8], index: 4, kind: output, shape index: {1}]  }
   0x1   :  { %12 = vsyncpa [#allocation3 + $0x1], 0  ;;  %s1198_s15 = smov 0   ;;  %s1200_s16 = smov 0  }
   0x2   :  { %s1202_s17 = smov 0   ;;  %s1204_s18 = smov 0  }
   0x3   :  { %s1206_s19 = smov 0   ;;  %s1208_s20 = smov 0  }
   0x4 LB: > { %s906_s21 = sadd.s32 4294967295, %s1161_s20   ;;  %s907_s22 = sadd.s32 4294967294, %s1161_s20   ;;  %s1161_s20 = sphi %s1208_s20, %s18_s20   ;;  %s1157_s19 = sphi %s1206_s19, %s1422_s19   ;;  %s1153_s18 = sphi %s1204_s18, %s1421_s18   ;;  %s1149_s17 = sphi %s1202_s17, %s1420_s17   ;;  %s1145_s16 = sphi %s1200_s16, %s1419_s16   ;;  %s1141_s15 = sphi %s1198_s15, %s1418_s15  }
   0x5   : > { %s30_s23 = sadd.s32 1, %s1157_s19  ;;  %s147_s24 = sadd.s32 1, %s1149_s17 }
   0x6   : > { %p32_p0 = scmp.ge.s32.totalorder %s30_s23, 2  ;;  %p157_p1 = scmp.ne.s32.totalorder %s1149_s17, %s1145_s16 }
   0x7   : > { %p158_p2 = scmp.eq.s32.totalorder %s906_s21, 1  ;;  %p163_p3 = scmp.ne.s32.totalorder %s1145_s16, %s1141_s15 }
   0x8   : > { %s1424_s23 = smov (%p32_p0, %s30_s23), 0  ;;  %p164_p5 = scmp.eq.s32.totalorder %s907_s22, 1 }
   0x9   : > { %p1238_p4 = por %p158_p2, %p157_p1  ;;  %s142_s26 = ssub.s32 %s1157_s19, %s1424_s23 }
   0xa   : > { %p910_p6 = scmp.ge.s32.totalorder %s1161_s20, 1  ;;  %p145_p7 = scmp.eq.s32.totalorder %s142_s26, 0 }
   0xb   : > { %p1245_p8 = por %p164_p5, %p163_p3  ;;  %p206_p9 = scmp.lt.s32.totalorder %s1161_s20, 3 }
   0xc   : > { %s1251_s28 = scalar_select %p145_p7, %s1149_s17, %s147_s24  }
   0xd   : > { %p207_p10 = pnand %p910_p6, %p206_p9 }
   0xe   : > { %p249_p11 = scmp.lt.s32.totalorder (!%p207_p10), %s1153_s18, 1  ;;  %v1163_v0 = vmov (!%p207_p10), 0.0   ;;  %vm1164_vm0 = vmmov (!%p207_p10), 0   ;;  %vm275_vm1 = vcmask (!%p207_p10), 64512   ;;  %s1165_s11 = smov (!%p207_p10), 120   ;;  %vm339_vm2 = vcmask (!%p207_p10), 1043456  }
   0xf   : > { %210 = sbr.rel (%p207_p10) target bundleno = 1483 (0x5cb), region = 32  ;;  %952 = vmatprep.subr.bf16.mxu0 (!%p207_p10), %v1163_v0  ;;  %954 = vmatprep.mubr.msk.bf16.mxu0 (!%p207_p10), %vm1164_vm0, %v1163_v0  ;;  %s1166_s12 = smov (!%p207_p10), 112  }
  0x10   : > { %958 = vmatprep.subr.bf16.mxu1 (!%p207_p10), %v1163_v0  ;;  %960 = vmatprep.mubr.msk.bf16.mxu1 (!%p207_p10), %vm1164_vm0, %v1163_v0  ;;  %s1167_s13 = smov (!%p207_p10), 104   ;;  %s246_s24 = sand.u32 (!%p207_p10), 1, %s1145_s16  }
  0x11   : > { %s911_s26 = sshll.u32 (!%p207_p10), %s246_s24, 5  ;;  %s1168_s5 = smov (!%p207_p10), 8  }
  0x12   : > { %s1169_s6 = smov (!%p207_p10), 16  }
  0x16   : > { %s250_s29 = scalar_select %p249_p11, %s1153_s18, 1 }
  0x18   : > { %s1261_s30 = sshll.u32 %s250_s29, 2  ;;  %s1297_s29 = scalar_lea.vmem [#allocation2], %s911_s26 }
  0x19   : > { %s259_s7 = scalar_lea.vmem %s1412_s1, %s1261_s30  ;;  %s255_s10 = scalar_lea.vmem %s1411_s0, %s1261_s30 }
  0x1a   : > { %v273_v1 = vld [vmem:[%s259_s7] sm:$0xf]  ;;  %s263_s22 = scalar_lea.vmem %s1413_s2, %s1261_s30  ;;  %s935_s7 = sshll.u32 %s1153_s18, 9 }
  0x1b   : > { %v280_v2 = vsel %vm275_vm1, %v273_v1, 0  ;;  %v272_v3 = vld [vmem:[%s255_s10] sm:$0xf]  ;;  %v919_v9 = vcombine.low %v273_v1, %v273_v1  ;;  %s776_s8 = sshll.u32 %s1297_s29, 4  ;;  %s1170_s18 = smov [#allocation2]   ;;  %s1354_s8 = int_to_ptr.vmem [resolvable:$true] %s776_s8 }
  0x1c   : > { %953 = vmatpush3.bf16.xpose.msra.mxu0 %v280_v2  ;;  %v918_v10 = vcombine.low %v272_v3, %v272_v3  ;;  %v1287_v16 = vld [vmem:[%s263_s22] sm:$0xf]  ;;  %s1087_s14 = sshll.u32 %s1170_s18, 4  ;;  %s1088_s14 = int_to_ptr.vmem [resolvable:$false] %s1087_s14 }
  0x1d   : > { %970 = vmatprep.subr.bf16.mxu0 %v1163_v0  ;;  %391 = vrot.lane.b32.xlu1 %v919_v9, %s1165_s11  ;;  %v341_v17 = vsel %vm339_vm2, %v1287_v16, 0  ;;  %v922_v60 = vcombine.low %v1287_v16, %v1287_v16  ;;  %s1089_s21 = scalar_lea.vmem %s1088_s14, 1024  ;;  %p1090_p1 = scmp.lt.s32.totalorder %s1354_s8, %s1088_s14 }
  0x1e   : > { %959 = vmatpush3.bf16.msra.mxu1 %v341_v17 }
  0x1f   : > { %964 = vmatprep.subr.bf16.mxu1 %v1163_v0 }
  0x21   : > { %386 = vrot.lane.b32.xlu1 %v918_v10, %s1165_s11 }
  0x23   : > { %955 = vmatmul.mubr.msk.bf16.vlgmr.msra.gmra.mrb[0].mxu0 %vm275_vm1, %v272_v3 }
  0x24   : > { %972 = vmatprep.mubr.msk.bf16.mxu0 %vm1164_vm0, %v1163_v0 }
  0x25   : > { %505 = vrot.lane.b32.xlu1 %v918_v10, %s1166_s12 }
  0x29   : > { %620 = vrot.lane.b32.xlu1 %v919_v9, %s1167_s13 }
  0x2d   : > { %618 = vrot.lane.b32.xlu1 %v918_v10, %s1167_s13 }
  0x8f   : > { %v392_v20 = vpop.permute.xlu1 %391 }
  0x90   : > { %v397_v22 = vsel %vm275_vm1, %v392_v20, 0 }
  0x93   : > { %v387_v24 = vpop.permute.xlu1 %386 }
  0x97   : > { %v506_v26 = vpop.permute.xlu1 %505 }
  0x9b   : > { %v621_v28 = vpop.permute.xlu1 %620 }
  0x9c   : > { %v626_v29 = vsel %vm275_vm1, %v621_v28, 0 }
  0x9f   : > { %v619_v30 = vpop.permute.xlu1 %618 }
  0xf6   : > { %v316_v4 = vpop.f32.mrb[0].mxu0 }
  0xf7   : > { %v956_v5 = vpop.f32.mrb[1].mxu0  ;;  %v322_v6 = vsel %vm275_vm1, %v316_v4, -inf }
  0xf8   : > { %323 = vmax.xlane.f32.xlu0 %v322_v6  ;;  %v319_v7 = vpop.f32.mrb[2].mxu0 }
  0xf9   : > { %v957_v8 = vpop.f32.mrb[3].mxu0 }
 0x185   : > { %v324_v11 = vpop.xlane.xlu0 %323 }
 0x186   : > { %v325_v12 = vsub.f32 %v316_v4, %v324_v11 }
 0x188   : > { %v326_v13 = vmul.f32 1.442695, %v325_v12 }
 0x18a   : > { %1067 = vpow2.f32 %v326_v13 }
 0x194   : > { %v1068_v14 = vpop.eup %1067 }
 0x195   : > { %v328_v15 = vsel %vm275_vm1, %v1068_v14, 0.0 }
 0x196   : > { %329 = vadd.xlane.f32.xlu0 %v328_v15 }
 0x1ac   : > { %507 = vrot.lane.b32.xlu0 %v919_v9, %s1166_s12 }
 0x223   : > { %v330_v18 = vpop.xlane.xlu0 %329 }
 0x224   : > { %1069 = vrcp.f32 %v330_v18 }
 0x227   : > { %v508_v25 = vpop.permute.xlu0 %507 }
 0x228   : > { %v513_v27 = vsel %vm275_vm1, %v508_v25, 0 }
 0x22e   : > { %v1070_v19 = vpop.eup %1069 }
 0x22f   : > { %v333_v21 = vmul.f32 %v1070_v19, %v1068_v14 }
 0x231   : > { %334 = vst.msk [vmem:[%s1297_s29] sm:$0xff] %vm275_vm1, %v333_v21  ;;  %v335_v23 = vpack.c.bf16 %v333_v21, %v333_v21 }
 0x233   : > { %961 = vmatmul.mubr.msk.bf16.vlgmr.msra.gmra.mrb[0].mxu1 %vm275_vm1, %v335_v23 }
 0x234   : > { %965 = vmatpush3.bf16.xpose.msra.mxu1 %v397_v22  ;;  %966 = vmatprep.mubr.msk.bf16.mxu1 %vm1164_vm0, %v1163_v0 }
 0x235   : > { %976 = vmatprep.subr.bf16.mxu1 %v1163_v0 }
 0x23b   : > { %967 = vmatmul.mubr.msk.bf16.vlgmr.msra.gmra.mrb[4].mxu1 %vm275_vm1, %v387_v24 }
 0x23c   : > { %977 = vmatpush3.bf16.xpose.msra.mxu1 %v513_v27  ;;  %978 = vmatprep.mubr.msk.bf16.mxu1 %vm1164_vm0, %v1163_v0 }
 0x23d   : > { %988 = vmatprep.subr.bf16.mxu1 %v1163_v0 }
 0x243   : > { %979 = vmatmul.mubr.msk.bf16.vlgmr.msra.gmra.mrb[8].mxu1 %vm275_vm1, %v506_v26 }
 0x244   : > { %989 = vmatpush3.bf16.xpose.msra.mxu1 %v626_v29  ;;  %990 = vmatprep.mubr.msk.bf16.mxu1 %vm1164_vm0, %v1163_v0 }
 0x24b   : > { %991 = vmatmul.mubr.msk.bf16.vlgmr.msra.gmra.mrb[12].mxu1 %vm275_vm1, %v619_v30 }
 0x306   : > { %v1315_v31 = vpop.f32.mrb[0].mxu1 }
 0x307   : > { %v962_v32 = vpop.f32.mrb[1].mxu1 }
 0x308   : > { %v380_v33 = vpop.f32.mrb[2].mxu1 }
 0x309   : > { %v963_v34 = vpop.f32.mrb[3].mxu1 }
 0x30e   : > { %v433_v35 = vpop.f32.mrb[4].mxu1 }
 0x30f   : > { %v968_v36 = vpop.f32.mrb[5].mxu1  ;;  %v439_v37 = vsel %vm275_vm1, %v433_v35, -inf }
 0x310   : > { %440 = vmax.xlane.f32.xlu1 %v439_v37  ;;  %v436_v38 = vpop.f32.mrb[6].mxu1 }
 0x311   : > { %v969_v39 = vpop.f32.mrb[7].mxu1 }
 0x316   : > { %v549_v40 = vpop.f32.mrb[8].mxu1 }
 0x317   : > { %v555_v41 = vsel %vm275_vm1, %v549_v40, -inf  ;;  %v980_v42 = vpop.f32.mrb[9].mxu1 }
 0x318   : > { %556 = vmax.xlane.f32.xlu0 %v555_v41  ;;  %v552_v43 = vpop.f32.mrb[10].mxu1 }
 0x319   : > { %v981_v44 = vpop.f32.mrb[11].mxu1 }
 0x31e   : > { %v662_v45 = vpop.f32.mrb[12].mxu1 }
 0x31f   : > { %v668_v46 = vsel %vm275_vm1, %v662_v45, -inf  ;;  %v992_v47 = vpop.f32.mrb[13].mxu1 }
 0x320   : > { %669 = vmax.xlane.f32.xlu1 %v668_v46  ;;  %v665_v48 = vpop.f32.mrb[14].mxu1 }
 0x321   : > { %v993_v49 = vpop.f32.mrb[15].mxu1 }
 0x39d   : > { %v441_v50 = vpop.xlane.xlu1 %440 }
 0x39e   : > { %v442_v51 = vsub.f32 %v433_v35, %v441_v50 }
 0x3a0   : > { %v443_v52 = vmul.f32 1.442695, %v442_v51 }
 0x3a2   : > { %1071 = vpow2.f32 %v443_v52 }
 0x3a5   : > { %v557_v53 = vpop.xlane.xlu0 %556 }
 0x3a6   : > { %v558_v54 = vsub.f32 %v549_v40, %v557_v53 }
 0x3a8   : > { %v559_v55 = vmul.f32 1.442695, %v558_v54 }
 0x3aa   : > { %1073 = vpow2.f32 %v559_v55 }
 0x3ac   : > { %v1072_v56 = vpop.eup %1071 }
 0x3ad   : > { %v445_v57 = vsel %vm275_vm1, %v1072_v56, 0.0  ;;  %v670_v61 = vpop.xlane.xlu1 %669 }
 0x3ae   : > { %446 = vadd.xlane.f32.xlu1 %v445_v57  ;;  %v671_v62 = vsub.f32 %v662_v45, %v670_v61 }
 0x3b0   : > { %v672_v63 = vmul.f32 1.442695, %v671_v62 }
 0x3b2   : > { %1075 = vpow2.f32 %v672_v63 }
 0x3b4   : > { %v1074_v58 = vpop.eup %1073 }
 0x3b5   : > { %v561_v59 = vsel %vm275_vm1, %v1074_v58, 0.0 }
 0x3b6   : > { %562 = vadd.xlane.f32.xlu0 %v561_v59 }
 0x3bc   : > { %v1076_v1 = vpop.eup %1075 }
 0x3bd   : > { %v674_v2 = vsel %vm275_vm1, %v1076_v1, 0.0 }
 0x3bf   : > { %570 = vrot.lane.b32.xlu1 %v922_v60, %s1166_s12  ;;  %s1358_s12 = scalar_lea.sflag [#allocation3], %s246_s24 }
 0x3cc   : > { %457 = vrot.lane.b32.xlu0 %v922_v60, %s1165_s11  ;;  %s1352_s11 = scalar_lea.hbm %s1415_s4, %s935_s7 }
 0x3e3   : > { %675 = vadd.xlane.f32.xlu1 %v674_v2 }
 0x3f4   : > { %683 = vrot.lane.b32.xlu1 %v922_v60, %s1167_s13  ;;  %s1083_s13 = scalar_lea.vmem %s1354_s8, 512 }
 0x3f5   : > { %p1084_p12 = scmp.ne.s32.totalorder %s1354_s8, %s1083_s13  ;;  %p1091_p2 = scmp.lt.s32.totalorder %s1089_s21, %s1083_s13 }
 0x3f7   : > { %p1085_p13 = pnand %p1084_p12, %p1238_p4  ;;  %p1092_p3 = por %p1091_p2, %p1090_p1 }
 0x3f9   : > { %p1086_p0 = pneg %p1085_p13 }
 0x3fb   : > { %p1093_p5 = pnand %p1092_p3, %p1086_p0 }
 0x43b   : > { %v447_v3 = vpop.xlane.xlu1 %446 }
 0x43c   : > { %1077 = vrcp.f32 %v447_v3 }
 0x43f   : > { %v571_v9 = vpop.permute.xlu1 %570 }
 0x440   : > { %v576_v11 = vsel %vm339_vm2, %v571_v9, 0 }
 0x443   : > { %v563_v4 = vpop.xlane.xlu0 %562 }
 0x444   : > { %1079 = vrcp.f32 %v563_v4 }
 0x446   : > { %v1078_v5 = vpop.eup %1077 }
 0x447   : > { %v450_v6 = vmul.f32 %v1078_v5, %v1072_v56  ;;  %v458_v7 = vpop.permute.xlu0 %457 }
 0x448   : > { %v463_v8 = vsel %vm339_vm2, %v458_v7, 0 }
 0x449   : > { %921 = vst.msk [vmem:[%s1297_s29 + $0x8] sm:$0xff] %vm275_vm1, %v450_v6  ;;  %971 = vmatpush3.bf16.msra.mxu0 %v463_v8  ;;  %v453_v10 = vpack.c.bf16 %v450_v6, %v450_v6 }
 0x44a   : > { %982 = vmatprep.subr.bf16.mxu0 %v1163_v0 }
 0x44c   : > { %973 = vmatmul.mubr.msk.bf16.vlgmr.msra.gmra.mrb[4].mxu0 %vm275_vm1, %v453_v10 }
 0x44d   : > { %983 = vmatpush3.bf16.msra.mxu0 %v576_v11  ;;  %984 = vmatprep.mubr.msk.bf16.mxu0 %vm1164_vm0, %v1163_v0 }
 0x44e   : > { %v1080_v12 = vpop.eup %1079  ;;  %994 = vmatprep.subr.bf16.mxu0 %v1163_v0 }
 0x44f   : > { %v566_v13 = vmul.f32 %v1080_v12, %v1074_v58 }
 0x451   : > { %925 = vst.msk [vmem:[%s1297_s29 + $0x10] sm:$0xff] %vm275_vm1, %v566_v13  ;;  %v569_v14 = vpack.c.bf16 %v566_v13, %v566_v13 }
 0x454   : > { %985 = vmatmul.mubr.msk.bf16.vlgmr.msra.gmra.mrb[8].mxu0 %vm275_vm1, %v569_v14 }
 0x455   : > { %996 = vmatprep.mubr.msk.bf16.mxu0 %vm1164_vm0, %v1163_v0 }
 0x470   : > { %v676_v15 = vpop.xlane.xlu1 %675 }
 0x471   : > { %1081 = vrcp.f32 %v676_v15 }
 0x474   : > { %v684_v16 = vpop.permute.xlu1 %683 }
 0x475   : > { %v689_v17 = vsel %vm339_vm2, %v684_v16, 0 }
 0x476   : > { %995 = vmatpush3.bf16.msra.mxu0 %v689_v17 }
 0x47b   : > { %v1082_v18 = vpop.eup %1081 }
 0x47c   : > { %v679_v19 = vmul.f32 %v1082_v18, %v1076_v1 }
 0x47e   : > { %928 = vst.msk [vmem:[%s1297_s29 + $0x18] sm:$0xff] %vm275_vm1, %v679_v19  ;;  %v682_v20 = vpack.c.bf16 %v679_v19, %v679_v19 }
 0x480   : > { %997 = vmatmul.mubr.msk.bf16.vlgmr.msra.gmra.mrb[12].mxu0 %vm275_vm1, %v682_v20 }
 0x51f   : > { %v499_v21 = vpop.f32.mrb[4].mxu0 }
 0x520   : > { %732 = vrot.lane.b32.xlu0 %v499_v21, %s1168_s5  ;;  %v974_v0 = vpop.f32.mrb[5].mxu0 }
 0x521   : > { %v502_v22 = vpop.f32.mrb[6].mxu0 }
 0x522   : > { %v975_v23 = vpop.f32.mrb[7].mxu0 }
 0x527   : > { %v612_v24 = vpop.f32.mrb[8].mxu0 }
 0x528   : > { %736 = vrot.lane.b32.xlu1 %v612_v24, %s1169_s6  ;;  %v986_v25 = vpop.f32.mrb[9].mxu0 }
 0x529   : > { %v615_v26 = vpop.f32.mrb[10].mxu0 }
 0x52a   : > { %v987_v27 = vpop.f32.mrb[11].mxu0 }
 0x52b   : > { %1096 = shalt.err (!%p1093_p5)
}
 0x52c   : > { %s1097_s22 = scalar_lea.hbm %s1352_s11, 512  ;;  %s1101_s29 = scalar_lea.hbm %s1415_s4, 1024 }
 0x52d   : > { %p1098_p6 = scmp.ne.s32.totalorder %s1352_s11, %s1097_s22  ;;  %p1102_p10 = scmp.lt.u32.totalorder %s1352_s11, %s1415_s4 }
 0x52e   : > { %p1103_p11 = scmp.lt.u32.totalorder %s1101_s29, %s1097_s22  ;;  %p1105_p13 = scmp.lt.u32.totalorder %s1097_s22, %s1352_s11 }
 0x52f   : > { %p1099_p7 = pnand %p1098_p6, %p1238_p4 }
 0x530   : > { %p1104_p12 = por %p1103_p11, %p1102_p10 }
 0x531   : > { %p1100_p9 = pneg %p1099_p7 }
 0x532   : > { %p1106_p0 = por %p1105_p13, %p1104_p12 }
 0x534   : > { %p1107_p1 = pnand %p1106_p0, %p1100_p9 }
 0x536   : > { %1110 = shalt.err (!%p1107_p1)
}
 0x537   : > { %s1171_s9 = smov 128   ;;  %s1172_s10 = smov 24   ;;  %vm744_vm3 = vcmask 130048   ;;  %vm746_vm4 = vcmask 195584   ;;  %vm749_vm5 = vcmask 257024  }
 0x538   : > { %1000 = dma.vmem_to_hbm [thread:$0]  (%p1238_p4), %s1354_s8, 512, %s1352_s11, %s1358_s12, %s1171_s9, %s1171_s9, %s1168_s5  }
 0x539   : > { %s270_s18 = scalar_lea.vmem %s1414_s3, %s1261_s30 }
 0x553   : > { %v725_v28 = vpop.f32.mrb[12].mxu0 }
 0x554   : > { %740 = vrot.lane.b32.xlu0 %v725_v28, %s1172_s10  ;;  %v998_v29 = vpop.f32.mrb[13].mxu0 }
 0x555   : > { %v728_v30 = vpop.f32.mrb[14].mxu0 }
 0x556   : > { %v999_v32 = vpop.f32.mrb[15].mxu0 }
 0x592   : > { %v733_v33 = vpop.permute.xlu0 %732 }
 0x593   : > { %v743_v35 = vsel %vm275_vm1, %v1315_v31, %v733_v33 }
 0x59a   : > { %v737_v34 = vpop.permute.xlu1 %736 }
 0x59b   : > { %v745_v36 = vsel %vm744_vm3, %v743_v35, %v737_v34 }
 0x5c6   : > { %v741_v37 = vpop.permute.xlu0 %740 }
 0x5c7   : > { %v747_v38 = vsel %vm746_vm4, %v745_v36, %v741_v37 }
 0x5c8   : > { %v748_v39 = vpack.c.bf16 %v747_v38, %v747_v38 }
 0x5ca   : > { %750 = vst.msk [vmem:[%s270_s18] sm:$0xf] %vm749_vm5, %v748_v39 }
 0x5cb PF: > { %p1006_p4 = scmp.ge.s32.totalorder %s1161_s20, 2  ;;  %s801_s5 = sand.u32 1, %s1141_s15  }
 0x5cc   : > { %s802_s8 = scalar_lea.sflag [#allocation3], %s801_s5 }
 0x5cd   : > { %p1003_p2 = pnand %p1006_p4, %p1245_p8 }
 0x5cf   : > { %1136 = dma.done.wait (!%p1003_p2), %s802_s8, 512  }
 0x5d0   : > { %1138 = vsyncadd (!%p1003_p2), %s802_s8, 4294966784  ;;  %s18_s20 = sadd.s32 1, %s1161_s20   ;;  %s1418_s15 = smov %s1145_s16 }
 0x5d1   : > { %p15_p3 = scmp.ge.s32.totalorder %s18_s20, 4   ;;  %s1419_s16 = smov %s1149_s17 }
 0x5d2   : > { %s1420_s17 = smov %s1251_s28  ;;  %s1421_s18 = smov %s1157_s19 }
 0x5d3   : > { %s1422_s19 = smov %s1424_s23  ;;  %17 = sbr.rel (!%p15_p3) target bundleno = 4 (0x4), region = 88 }
 0x5da   :  { %807 = vsyncpa [#allocation3], 1 }
 0x5db   :  { %809 = vsyncpa [#allocation3 + $0x1], 1 }

</bundles_post_ra>
